<compile_context>
chip_gen: v7x
topology: tpu7x:2x2x1
jax: 0.10.0
libtpu: 0.0.40
codegen_flags: <defaults>
</compile_context>

<pallas_src>
import jax
import jax.numpy as jnp
from jax.experimental import pallas as pl
from jax.experimental.pallas import tpu as pltpu


def _round_up(a, m):
    return (a + m - 1) // m * m


def _linear_kernel(x_ref, wt_ref, o_ref):
    # x_ref: (tb, n_in), wt_ref: (n_in, tn), o_ref: (tb, tn)
    o_ref[...] = jnp.dot(
        x_ref[...], wt_ref[...], preferred_element_type=jnp.float32
    ).astype(o_ref.dtype)


def _linear_bf16_kernel(x_ref, wt_ref, o_ref):
    # In-kernel cast of x to bf16 (wrapper-side cast would be an extra,
    # un-fused HBM pass over x). W is already bf16 in HBM.
    o_ref[...] = jnp.dot(
        x_ref[...].astype(jnp.bfloat16),
        wt_ref[...],
        preferred_element_type=jnp.float32,
    ).astype(o_ref.dtype)


def lr_forward(x, w, *, tile_budget_bytes=4 << 20, use_bf16=False):
    """Pallas forward for LR: y = x @ W.T, W shape (n_out, n_in), no bias.

    tile_budget_bytes: target per-buffer VMEM budget used to size the batch
                       tile (rounded to a multiple of 8 rows).
    use_bf16:          feed the MXU bf16 inputs (f32 accumulation); x is cast
                       inside the kernel. Default False (bit-exact f32).
    """
    B, n_in = x.shape
    n_out, n_in_w = w.shape
    assert n_in == n_in_w, "feature dim mismatch"
    out_dtype = x.dtype

    # One-time (tiny) transpose outside the kernel: standard K-on-sublane
    # contraction inside, no in-kernel transpose of W.
    wt = w.T  # (n_in, n_out)
    if use_bf16:
        wt = wt.astype(jnp.bfloat16)

    x_item = x.dtype.itemsize
    w_item = wt.dtype.itemsize
    o_item = jnp.dtype(out_dtype).itemsize

    # ---------- n_out layout / tiling ----------
    W_RESIDENT_BYTES = 8 << 20  # keep W resident (double-buffered) below this
    n_out_128 = _round_up(n_out, 128)

    if n_out_128 * n_in * w_item <= W_RESIDENT_BYTES:
        # Small weight: keep W fully resident across all grid steps.
        # Pad n_out to a multiple of 128 only if it adds <=12.5% output
        # traffic (lane-dense unmasked stores); otherwise keep the exact
        # n_out (full-array last dim satisfies the lane rule, masked stores
        # are cheaper than 8x extra HBM writes + a post-slice pass).
        if n_out % 128 == 0 or (n_out_128 - n_out) * 8 <= n_out:
            n_out_p = n_out_128
        else:
            n_out_p = n_out
        tn = n_out_p
    else:
        # Large output head: tile n_out so the W block is bounded in VMEM on
        # every generation (incl. v7x's 64 MiB). n_out is large here, so the
        # pad-to-128 overhead is negligible.
        n_out_p = n_out_128
        tn = (W_RESIDENT_BYTES // (n_in * w_item)) // 128 * 128
        tn = max(128, min(n_out_p, tn))

    if n_out_p != n_out:
        wt = jnp.pad(wt, ((0, 0), (0, n_out_p - n_out)))
    n_tiles = pl.cdiv(n_out_p, tn)

    # ---------- batch tiling (sized by bytes, multiple of 8 rows) ----------
    row_bytes = n_in * x_item + tn * o_item
    tb = max(8, (tile_budget_bytes // max(row_bytes, 1)) // 8 * 8)
    if B > 8:
        # Guarantee >=2 batch tiles when possible so the "parallel" axis has
        # work for both TensorCores on v7x (no-op cost on v5e/v6e).
        tb = min(tb, _round_up(pl.cdiv(B, 2), 8))
    tb = min(tb, _round_up(B, 8))
    assert tb % 8 == 0, "batch tile must be a multiple of 8 sublanes"
    n_b = pl.cdiv(B, tb)

    # ---------- explicit, generation-aware VMEM limit ----------
    vmem_need = (
        2 * tb * n_in * x_item      # double-buffered x tiles
        + 2 * n_in * tn * w_item    # double-buffered W tiles
        + 2 * tb * tn * o_item      # double-buffered output tiles
    )
    vmem_limit = int(min(max(vmem_need + (2 << 20), 16 << 20), 48 << 20))

    kernel = _linear_bf16_kernel if use_bf16 else _linear_kernel

    # TODO(synk): W's block index is constant along the batch axis; when the
    # API stabilizes, pipeline_mode=pl.Buffered(1) on the W spec would halve
    # its resident footprint with no pipelining loss.
    y = pl.pallas_call(
        kernel,
        out_shape=jax.ShapeDtypeStruct((B, n_out_p), out_dtype),
        grid_spec=pltpu.PrefetchScalarGridSpec(
            num_scalar_prefetch=0,
            grid=(n_b, n_tiles),
            in_specs=[
                # x: tiled over batch, features on the lane axis.
                pl.BlockSpec((tb, n_in), lambda i, j: (i, 0)),
                # W^T: resident (n_tiles == 1) or tiled over n_out.
                pl.BlockSpec((n_in, tn), lambda i, j: (0, j)),
            ],
            out_specs=pl.BlockSpec((tb, tn), lambda i, j: (i, j)),
        ),
        compiler_params=pltpu.CompilerParams(
            # Independent batch / n_out tiles -> shard across v7x's two TCs.
            dimension_semantics=("parallel", "parallel"),
            vmem_limit_bytes=vmem_limit,
        ),
    )(x, wt)

    return y if n_out_p == n_out else y[:, :n_out]


if __name__ == "__main__":
    # Small shapes consistent with a logistic-regression module.
    B, n_in, n_out = 8, 32, 16

    key = jax.random.PRNGKey(0)
    kx, kw = jax.random.split(key)

    x = jax.random.normal(kx, (B, n_in), dtype=jnp.float32)

    # Deterministic param init, matching PyTorch Linear default:
    # U(-1/sqrt(n_in), 1/sqrt(n_in)), weight shape (n_out, n_in).
    bound = 1.0 / jnp.sqrt(jnp.float32(n_in))
    w = jax.random.uniform(
        kw, (n_out, n_in), dtype=jnp.float32, minval=-bound, maxval=bound
    )

    y = lr_forward(x, w)
    jax.block_until_ready(y)

    # Correctness check against plain JAX reference.
    y_ref = x @ w.T
    assert y.shape == (B, n_out)
    assert jnp.allclose(y, y_ref, atol=1e-5, rtol=1e-5), "mismatch vs reference"

    # TODO(synk): for production DP-SGD at these toy shapes, fuse this matmul
    # into the surrounding per-sample-grad/clipping kernel instead of paying a
    # standalone pallas_call launch; kept standalone here per the task spec.

    print("KERNEL_OK")
</pallas_src>

<mosaic_0001>
module attributes {stable_mosaic.version = 11 : i64} {
  func.func @_linear_kernel(%arg0: i32, %arg1: i32, %arg2: memref<8x32xf32, #tpu.memory_space<vmem>>, %arg3: memref<32x16xf32, #tpu.memory_space<vmem>>, %arg4: memref<8x16xf32, #tpu.memory_space<vmem>>) attributes {dimension_semantics = [#tpu.dimension_semantics<parallel>, #tpu.dimension_semantics<parallel>], iteration_bounds = array<i64: 1, 1>, scalar_prefetch = 0 : i64, scratch_operands = 0 : i64, tpu.core_type = #tpu.core_type<tc>, window_params = [{transform_indices = @transform_0, window_bounds = array<i64: 8, 32>}, {transform_indices = @transform_1, window_bounds = array<i64: 32, 16>}, {transform_indices = @transform_2, window_bounds = array<i64: 8, 16>}]} {
    %c0 = arith.constant 0 : index
    %c0_0 = arith.constant 0 : index
    %0 = vector.load %arg2[%c0, %c0_0] : memref<8x32xf32, #tpu.memory_space<vmem>>, vector<8x32xf32>
    %c0_1 = arith.constant 0 : index
    %c0_2 = arith.constant 0 : index
    %1 = vector.load %arg3[%c0_1, %c0_2] : memref<32x16xf32, #tpu.memory_space<vmem>>, vector<32x16xf32>
    %cst = arith.constant dense<0.000000e+00> : vector<8x16xf32>
    %2 = tpu.matmul %0, %1, %cst {dimension_numbers = #tpu.dot_dimension_numbers<[1], [0], [0], [1], [0, 0, 1, 1], [], []>} : vector<8x32xf32>, vector<32x16xf32>, vector<8x16xf32> -> vector<8x16xf32>
    %c0_3 = arith.constant 0 : index
    %c0_4 = arith.constant 0 : index
    %3 = vector.load %arg4[%c0_3, %c0_4] : memref<8x16xf32, #tpu.memory_space<vmem>>, vector<8x16xf32>
    tpu.vector_store %arg4[%c0_3, %c0_4], %2 {strides = array<i32>} : memref<8x16xf32, #tpu.memory_space<vmem>>, vector<8x16xf32>,
    return
  }
  func.func @transform_0(%arg0: i32, %arg1: i32) -> (i32, i32) {
    %c0_i32 = arith.constant 0 : i32
    %c0_i32_0 = arith.constant 0 : i32
    return %arg0, %c0_i32 : i32, i32
  }
  func.func @transform_1(%arg0: i32, %arg1: i32) -> (i32, i32) {
    %c0_i32 = arith.constant 0 : i32
    %c0_i32_0 = arith.constant 0 : i32
    return %c0_i32, %arg1 : i32, i32
  }
  func.func @transform_2(%arg0: i32, %arg1: i32) -> (i32, i32) {
    %c0_i32 = arith.constant 0 : i32
    return %arg0, %arg1 : i32, i32
  }
}

</mosaic_0001>

<bundles_post_ra>
// kernel: tpu_custom_call.1
= control target key start
LH: loop header
LB: loop body
LE: loop exit
PB: predicated region body
PF: predicated region fallthrough
CT: control target
= control target key end

     0   :  { %v158_v3 = vmov 0.0|0.0   ;;  %vm159_vm0 = vmmov 0   ;;  %v160_v6 = vmov 0.0   ;;  %s204_s0 = inlined_call_operand.vmem [shape: f32[8,32], index: 0, kind: input, shape index: {}]   ;;  %s205_s1 = inlined_call_operand.vmem [shape: f32[32,16], index: 1, kind: input, shape index: {}]   ;;  %s206_s2 = inlined_call_operand.hbm [shape: f32[8,16], index: 2, kind: output, shape index: {}]  }
   0x1   :  { %v13_v0 = vld [vmem:[%s205_s1] sm:$0xff]  ;;  %v14_v1 = vld [vmem:[%s205_s1 + $0x8] sm:$0xff]  ;;  %v15_v2 = vld [vmem:[%s205_s1 + $0x10] sm:$0xff]  ;;  %124 = vmatprep.subr.bf16.mxu0 %v158_v3  ;;  %121 = vmatprep.mubr.msk.f32.mxu0 %vm159_vm0, %v160_v6 }
   0x2   :  { %v125_v4 = vpack.c.bf16 %v14_v1, %v13_v0  ;;  %v16_v5 = vld [vmem:[%s205_s1 + $0x18] sm:$0xff] }
   0x3   :  { %7 = vsyncpa [#allocation3], 0  ;;  %v128_v7 = vpack.c.bf16 %v16_v5, %v15_v2  ;;  %v12_v8 = vld [vmem:[%s204_s0] sm:$0xff]  ;;  %vm17_vm1 = vcmask 261120   ;;  %s161_s19 = smov [#allocation2]   ;;  %vm91_vm2 = vcmask 130048  }
   0x4   :  { %126 = vmatpush3.bf16.msra.mxu0 %v125_v4  ;;  %s99_s20 = sshll.u32 %s161_s19, 4  ;;  %s100_s20 = int_to_ptr.vmem [resolvable:$true] %s99_s20 }
   0x5   :  { %127 = vmatprep.subr.bf16.mxu0 %v158_v3  ;;  %s134_s1 = scalar_lea.vmem %s100_s20, 128  ;;  %p139_p1 = scmp.lt.s32.totalorder %s100_s20, %s100_s20 }
   0x6   :  { %p135_p0 = scmp.ne.s32.totalorder %s100_s20, %s134_s1  ;;  %p140_p2 = scmp.lt.s32.totalorder %s134_s1, %s134_s1 }
   0x8   :  { %129 = vmatpush3.bf16.msra.mxu0 %v128_v7  ;;  %p141_p3 = por %p140_p2, %p139_p1 }
   0xa   :  { %p142_p4 = pnand %p141_p3, %p135_p0 }
   0xb   :  { %122 = vmatmul.mubr.msk.f32.vlgmr.msra.gmra.mrb[0].mxu0 %vm17_vm1, %v12_v8 }
  0xde   :  { %v87_v9 = vpop.f32.mrb[0].mxu0 }
  0xdf   :  { %92 = vst.msk [vmem:[#allocation2] sm:$0xff] %vm91_vm2, %v87_v9  ;;  %v123_v10 = vpop.f32.mrb[1].mxu0 }
  0xe0   :  { %145 = shalt.err (!%p142_p4)
}
  0xe1   :  { %s146_s0 = scalar_lea.hbm %s206_s2, 128 }
  0xe2   :  { %p147_p5 = scmp.ne.s32.totalorder %s206_s2, %s146_s0  ;;  %p150_p6 = scmp.lt.u32.totalorder %s146_s0, %s206_s2 }
  0xe4   :  { %p152_p7 = pnand %p150_p6, %p147_p5 }
  0xe6   :  { %155 = shalt.err (!%p152_p7)
}
  0xe7   :  { %102 = dma.vmem_to_hbm [thread:$0]  %s100_s20, 128, %s206_s2, [#allocation3]  }
  0xe8   :  { %156 = dma.done.wait [#allocation3], 128  }
  0xe9   :  { %157 = vsyncadd [#allocation3], 4294967168 }
  0xea   :  { %106 = vsyncpa [#allocation3], 1 }

</bundles_post_ra>
